<compile_context>
chip_gen: v5e
topology: v5e:2x2
jax: 0.10.0
libtpu: 0.0.40
codegen_flags: <defaults>
</compile_context>

<pallas_src>
import jax
import jax.numpy as jnp
from jax.experimental import pallas as pl
from jax.experimental.pallas import tpu as pltpu

EPS = 1e-5               # nn.BatchNorm2d default eps
LANE = 128               # channel dim padded to a multiple of the lane width
MXU_DTYPE = jnp.bfloat16


def _round_up(v, m):
    return (v + m - 1) // m * m


# --------------------------------------------------------------------------
# Pallas kernels
# --------------------------------------------------------------------------
def conv_stats_kernel(p_ref, w_ref, z_ref, sum_ref, sq_ref):
    """z = patches @ W (bf16 operands, f32 accumulation) for one M-tile, plus
    per-channel sum / sum-of-squares accumulated across the M grid axis into
    resident (1, Cpad) blocks (init on the first grid step)."""
    i = pl.program_id(0)
    z = jnp.dot(p_ref[...], w_ref[...], preferred_element_type=jnp.float32)
    z_ref[...] = z

    @pl.when(i == 0)
    def _():
        sum_ref[...] = jnp.zeros_like(sum_ref)
        sq_ref[...] = jnp.zeros_like(sq_ref)

    sum_ref[...] += jnp.sum(z, axis=0, keepdims=True)
    sq_ref[...] += jnp.sum(z * z, axis=0, keepdims=True)


def bn_relu_kernel(z_ref, aff_ref, y_ref):
    """y = relu(scale * z + shift); aff row 0 = scale, row 1 = shift."""
    y_ref[...] = jnp.maximum(
        z_ref[...] * aff_ref[0:1, :] + aff_ref[1:2, :], 0.0)


def bn_add_relu_kernel(z_ref, aff_ref, xs_ref, o_ref):
    """out = relu(scale * z + shift + x)   (identity shortcut)."""
    o_ref[...] = jnp.maximum(
        z_ref[...] * aff_ref[0:1, :] + aff_ref[1:2, :] + xs_ref[...], 0.0)


def bn_conv1x1_add_relu_kernel(z_ref, aff_ref, xs_ref, w3_ref, o_ref):
    """out = relu(scale * z + shift + x @ w3)  (1x1-conv shortcut; its bias is
    pre-folded into the shift row)."""
    sc = jnp.dot(xs_ref[...], w3_ref[...], preferred_element_type=jnp.float32)
    o_ref[...] = jnp.maximum(
        z_ref[...] * aff_ref[0:1, :] + aff_ref[1:2, :] + sc, 0.0)


# --------------------------------------------------------------------------
# pallas_call wrappers (tiled over M)
# --------------------------------------------------------------------------
def _compiler_params(semantics):
    # Explicit scoped-VMEM budget: safe on v5e/v6e (128 MiB phys) and within
    # v7x's 64 MiB physical VMEM.  Per-tile usage here is far below this.
    return pltpu.CompilerParams(dimension_semantics=semantics,
                                vmem_limit_bytes=32 * 1024 * 1024)


def _conv_stats(patches, w, tile_m):
    Mp, K = patches.shape
    Cp = w.shape[1]
    return pl.pallas_call(
        conv_stats_kernel,
        grid=(Mp // tile_m,),
        in_specs=[pl.BlockSpec((tile_m, K), lambda i: (i, 0)),
                  pl.BlockSpec((K, Cp), lambda i: (0, 0))],
        out_specs=[pl.BlockSpec((tile_m, Cp), lambda i: (i, 0)),
                   pl.BlockSpec((1, Cp), lambda i: (0, 0)),
                   pl.BlockSpec((1, Cp), lambda i: (0, 0))],
        out_shape=[jax.ShapeDtypeStruct((Mp, Cp), jnp.float32),
                   jax.ShapeDtypeStruct((1, Cp), jnp.float32),
                   jax.ShapeDtypeStruct((1, Cp), jnp.float32)],
        # Accumulator outputs stay resident across the M axis -> "arbitrary".
        compiler_params=_compiler_params(("arbitrary",)),
    )(patches, w)


def _bn_relu(z, aff, tile_m):
    Mp, Cp = z.shape
    return pl.pallas_call(
        bn_relu_kernel,
        grid=(Mp // tile_m,),
        in_specs=[pl.BlockSpec((tile_m, Cp), lambda i: (i, 0)),
                  pl.BlockSpec((2, Cp), lambda i: (0, 0))],
        out_specs=pl.BlockSpec((tile_m, Cp), lambda i: (i, 0)),
        out_shape=jax.ShapeDtypeStruct((Mp, Cp), jnp.float32),
        compiler_params=_compiler_params(("parallel",)),
    )(z, aff)


def _bn_add_relu(z, aff, xs, tile_m):
    Mp, Cp = z.shape
    return pl.pallas_call(
        bn_add_relu_kernel,
        grid=(Mp // tile_m,),
        in_specs=[pl.BlockSpec((tile_m, Cp), lambda i: (i, 0)),
                  pl.BlockSpec((2, Cp), lambda i: (0, 0)),
                  pl.BlockSpec((tile_m, Cp), lambda i: (i, 0))],
        out_specs=pl.BlockSpec((tile_m, Cp), lambda i: (i, 0)),
        out_shape=jax.ShapeDtypeStruct((Mp, Cp), jnp.float32),
        compiler_params=_compiler_params(("parallel",)),
    )(z, aff, xs)


def _bn_conv1x1_add_relu(z, aff, xs, w3, tile_m):
    Mp, Cp = z.shape
    Cin = xs.shape[1]
    return pl.pallas_call(
        bn_conv1x1_add_relu_kernel,
        grid=(Mp // tile_m,),
        in_specs=[pl.BlockSpec((tile_m, Cp), lambda i: (i, 0)),
                  pl.BlockSpec((2, Cp), lambda i: (0, 0)),
                  pl.BlockSpec((tile_m, Cin), lambda i: (i, 0)),
                  pl.BlockSpec((Cin, Cp), lambda i: (0, 0))],
        out_specs=pl.BlockSpec((tile_m, Cp), lambda i: (i, 0)),
        out_shape=jax.ShapeDtypeStruct((Mp, Cp), jnp.float32),
        compiler_params=_compiler_params(("parallel",)),
    )(z, aff, xs, w3)


# --------------------------------------------------------------------------
# Plain-JAX glue: im2col, weight re-layout, padding, BN stat folding
# --------------------------------------------------------------------------
def _im2col(x_nhwc, ksize, stride, pad):
    """Returns (patches (N*Ho*Wo, k*k*C), (N, Ho, Wo))."""
    N, H, W, C = x_nhwc.shape
    xp = jnp.pad(x_nhwc, ((0, 0), (pad, pad), (pad, pad), (0, 0)))
    Ho = (H + 2 * pad - ksize) // stride + 1
    Wo = (W + 2 * pad - ksize) // stride + 1
    cols = []
    for di in range(ksize):
        for dj in range(ksize):
            cols.append(xp[:, di:di + stride * Ho:stride,
                           dj:dj + stride * Wo:stride, :])
    patches = jnp.concatenate(cols, axis=-1)  # (N, Ho, Wo, k*k*C)
    return patches.reshape(N * Ho * Wo, ksize * ksize * C), (N, Ho, Wo)


def _to_matmul_weight(w_oihw, cpad):
    """(Cout,Cin,kh,kw) -> (kh*kw*Cin, Cpad) bf16, Cout padded to lane width."""
    co, ci, kh, kw = w_oihw.shape
    w = jnp.transpose(w_oihw, (2, 3, 1, 0)).reshape(kh * kw * ci, co)
    return jnp.pad(w, ((0, 0), (0, cpad - co))).astype(MXU_DTYPE)


def _pad_rows(a, mp):
    return jnp.pad(a, ((0, mp - a.shape[0]), (0, 0)))


def _fold_bn(zsum, zsq, gamma, beta, m_real, cpad, extra_shift=None):
    """Per-channel fold of batch stats into (scale, shift) rows (2, Cpad)."""
    g = jnp.pad(gamma.astype(jnp.float32), (0, cpad - gamma.shape[0]))
    b = jnp.pad(beta.astype(jnp.float32), (0, cpad - beta.shape[0]))
    mean = zsum[0] / m_real
    var = jnp.maximum(zsq[0] / m_real - mean * mean, 0.0)   # biased, like PyTorch
    scale = g * jax.lax.rsqrt(var + EPS)
    shift = b - mean * scale
    if extra_shift is not None:   # conv3 bias folds into the shift row
        shift = shift + jnp.pad(extra_shift.astype(jnp.float32),
                                (0, cpad - extra_shift.shape[0]))
    return jnp.stack([scale, shift])


# --------------------------------------------------------------------------
# Residual.forward with Pallas kernels
# --------------------------------------------------------------------------
def residual_forward(x_nchw, params, use_1x1conv, stride, tile_m=512):
    x = jnp.transpose(x_nchw, (0, 2, 3, 1)).astype(jnp.float32)  # NHWC
    N, H, W, Cin = x.shape
    Cout = params["w1"].shape[0]
    Cpad = _round_up(Cout, LANE)

    # ---- conv1 (matmul + batch-stat accumulation) ----
    p1, (_, Ho, Wo) = _im2col(x, 3, stride, 1)
    M = N * Ho * Wo
    tile_m = _round_up(min(tile_m, M), 8)
    Mp = _round_up(M, tile_m)
    p1 = _pad_rows(p1, Mp).astype(MXU_DTYPE)     # padded rows are exact zeros
    w1m = _to_matmul_weight(params["w1"], Cpad)
    z1, s1, q1 = _conv_stats(p1, w1m, tile_m)
    # Conv bias before train-mode BN cancels in the mean subtraction, so b1/b2
    # are omitted from the kernels (verified against the biased reference).
    aff1 = _fold_bn(s1, q1, params["g1"], params["be1"], M, Cpad)

    # ---- bn1 + relu ----
    y = _bn_relu(z1, aff1, tile_m)
    y_nhwc = y[:M, :Cout].reshape(N, Ho, Wo, Cout)

    # ---- conv2 (matmul + batch-stat accumulation) ----
    p2, _ = _im2col(y_nhwc, 3, 1, 1)
    p2 = _pad_rows(p2, Mp).astype(MXU_DTYPE)
    w2m = _to_matmul_weight(params["w2"], Cpad)
    z2, s2, q2 = _conv_stats(p2, w2m, tile_m)

    # ---- bn2 + shortcut + relu ----
    if use_1x1conv:
        aff2 = _fold_bn(s2, q2, params["g2"], params["be2"], M, Cpad,
                        extra_shift=params["b3"])
        # stride-s subsampling == 1x1 conv stride s, pad 0:
        # len(range(0, H, s)) = floor((H-1)/s)+1 = Ho for all H, s.
        xs = x[:, ::stride, ::stride, :].reshape(M, Cin)
        xs = _pad_rows(xs, Mp).astype(MXU_DTYPE)
        w3m = _to_matmul_weight(params["w3"], Cpad)
        out = _bn_conv1x1_add_relu(z2, aff2, xs, w3m, tile_m)
    else:
        assert stride == 1 and Cin == Cout
        aff2 = _fold_bn(s2, q2, params["g2"], params["be2"], M, Cpad)
        xs = jnp.pad(x.reshape(M, Cin), ((0, Mp - M), (0, Cpad - Cin)))
        out = _bn_add_relu(z2, aff2, xs, tile_m)

    out = out[:M, :Cout].reshape(N, Ho, Wo, Cout)
    return jnp.transpose(out, (0, 3, 1, 2))  # back to NCHW


# --------------------------------------------------------------------------
# Deterministic parameter init (shapes follow Residual.__init__)
# --------------------------------------------------------------------------
def init_params(key, cin, cout, use_1x1conv):
    ks = jax.random.split(key, 10)
    p = {
        "w1": 0.2 * jax.random.normal(ks[0], (cout, cin, 3, 3), jnp.float32),
        "b1": 0.1 * jax.random.normal(ks[1], (cout,), jnp.float32),
        "w2": 0.2 * jax.random.normal(ks[2], (cout, cout, 3, 3), jnp.float32),
        "b2": 0.1 * jax.random.normal(ks[3], (cout,), jnp.float32),
        "g1": 1.0 + 0.1 * jax.random.normal(ks[4], (cout,), jnp.float32),
        "be1": 0.1 * jax.random.normal(ks[5], (cout,), jnp.float32),
        "g2": 1.0 + 0.1 * jax.random.normal(ks[6], (cout,), jnp.float32),
        "be2": 0.1 * jax.random.normal(ks[7], (cout,), jnp.float32),
    }
    if use_1x1conv:
        p["w3"] = 0.2 * jax.random.normal(ks[8], (cout, cin, 1, 1), jnp.float32)
        p["b3"] = 0.1 * jax.random.normal(ks[9], (cout,), jnp.float32)
    return p


# --------------------------------------------------------------------------
# Pure-JAX reference (mirrors the PyTorch forward, NCHW).  op_dtype=bfloat16
# reproduces the bf16 MXU operand rounding for a tight comparison.
# --------------------------------------------------------------------------
def _conv2d_ref(x, w, b, stride, pad, op_dtype=jnp.float32):
    y = jax.lax.conv_general_dilated(
        x.astype(op_dtype), w.astype(op_dtype), (stride, stride),
        ((pad, pad), (pad, pad)),
        dimension_numbers=("NCHW", "OIHW", "NCHW"),
        preferred_element_type=jnp.float32,
        precision=jax.lax.Precision.HIGHEST)
    return y + b[None, :, None, None]


def _bn_ref(x, g, b):
    mean = jnp.mean(x, axis=(0, 2, 3), keepdims=True)
    var = jnp.mean((x - mean) ** 2, axis=(0, 2, 3), keepdims=True)
    return (x - mean) * jax.lax.rsqrt(var + EPS) * g[None, :, None, None] \
        + b[None, :, None, None]


def residual_ref(x, params, use_1x1conv, stride, op_dtype=jnp.float32):
    Y = jax.nn.relu(_bn_ref(
        _conv2d_ref(x, params["w1"], params["b1"], stride, 1, op_dtype),
        params["g1"], params["be1"]))
    Y = _bn_ref(_conv2d_ref(Y, params["w2"], params["b2"], 1, 1, op_dtype),
                params["g2"], params["be2"])
    if use_1x1conv:
        x = _conv2d_ref(x, params["w3"], params["b3"], stride, 0, op_dtype)
    return jax.nn.relu(Y + x)


if __name__ == "__main__":
    key = jax.random.PRNGKey(0)
    kx1, kp1, kx2, kp2 = jax.random.split(key, 4)

    # Config A: Residual(4, 8, use_1x1conv=True, stride=2), x: (2, 4, 16, 16)
    # tile_m=64 -> grid of 2 over M=128 (exercises the stat accumulator).
    x1 = jax.random.normal(kx1, (2, 4, 16, 16), jnp.float32)
    pA = init_params(kp1, 4, 8, use_1x1conv=True)
    outA = jax.block_until_ready(
        residual_forward(x1, pA, use_1x1conv=True, stride=2, tile_m=64))
    assert outA.shape == (2, 8, 8, 8)
    refA_bf = residual_ref(x1, pA, True, 2, op_dtype=jnp.bfloat16)
    refA_32 = residual_ref(x1, pA, True, 2, op_dtype=jnp.float32)
    errA = float(jnp.max(jnp.abs(outA - refA_bf)))
    assert errA < 1e-2, f"config A mismatch vs bf16-matched ref: {errA}"
    errA32 = float(jnp.max(jnp.abs(outA - refA_32)))
    assert errA32 < 1e-1, f"config A mismatch vs f32 ref: {errA32}"

    # Config B: Residual(8, 8) (identity shortcut, stride=1), x: (2, 8, 16, 16)
    # tile_m=128 -> grid of 4 over M=512.
    x2 = jax.random.normal(kx2, (2, 8, 16, 16), jnp.float32)
    pB = init_params(kp2, 8, 8, use_1x1conv=False)
    outB = jax.block_until_ready(
        residual_forward(x2, pB, use_1x1conv=False, stride=1, tile_m=128))
    assert outB.shape == (2, 8, 16, 16)
    refB_bf = residual_ref(x2, pB, False, 1, op_dtype=jnp.bfloat16)
    refB_32 = residual_ref(x2, pB, False, 1, op_dtype=jnp.float32)
    errB = float(jnp.max(jnp.abs(outB - refB_bf)))
    assert errB < 1e-2, f"config B mismatch vs bf16-matched ref: {errB}"
    errB32 = float(jnp.max(jnp.abs(outB - refB_32)))
    assert errB32 < 1e-1, f"config B mismatch vs f32 ref: {errB32}"

    print("KERNEL_OK")
</pallas_src>

<mosaic_0001>
module attributes {stable_mosaic.version = 11 : i64} {
  func.func @conv_stats_kernel(%arg0: i32, %arg1: memref<64x36xbf16, #tpu.memory_space<vmem>>, %arg2: memref<36x128xbf16, #tpu.memory_space<vmem>>, %arg3: memref<64x128xf32, #tpu.memory_space<vmem>>, %arg4: memref<1x128xf32, #tpu.memory_space<vmem>>, %arg5: memref<1x128xf32, #tpu.memory_space<vmem>>) attributes {dimension_semantics = [#tpu.dimension_semantics<arbitrary>], iteration_bounds = array<i64: 2>, scalar_prefetch = 0 : i64, scratch_operands = 0 : i64, tpu.core_type = #tpu.core_type<tc>, window_params = [{transform_indices = @transform_0, window_bounds = array<i64: 64, 36>}, {pipeline_mode = #tpu.pipeline_mode<synchronous>, transform_indices = @transform_1, window_bounds = array<i64: 36, 128>}, {transform_indices = @transform_2, window_bounds = array<i64: 64, 128>}, {pipeline_mode = #tpu.pipeline_mode<synchronous>, transform_indices = @transform_3, window_bounds = array<i64: 1, 128>}, {pipeline_mode = #tpu.pipeline_mode<synchronous>, transform_indices = @transform_4, window_bounds = array<i64: 1, 128>}]} {
    %c0 = arith.constant 0 : index
    %c0_0 = arith.constant 0 : index
    %0 = vector.load %arg1[%c0, %c0_0] : memref<64x36xbf16, #tpu.memory_space<vmem>>, vector<64x36xbf16>
    %c0_1 = arith.constant 0 : index
    %c0_2 = arith.constant 0 : index
    %1 = vector.load %arg2[%c0_1, %c0_2] : memref<36x128xbf16, #tpu.memory_space<vmem>>, vector<36x128xbf16>
    %cst = arith.constant dense<0.000000e+00> : vector<64x128xf32>
    %2 = tpu.matmul %0, %1, %cst {dimension_numbers = #tpu.dot_dimension_numbers<[1], [0], [0], [1], [0, 0, 1, 1], [], []>} : vector<64x36xbf16>, vector<36x128xbf16>, vector<64x128xf32> -> vector<64x128xf32>
    %c0_3 = arith.constant 0 : index
    %c0_4 = arith.constant 0 : index
    %3 = vector.load %arg3[%c0_3, %c0_4] : memref<64x128xf32, #tpu.memory_space<vmem>>, vector<64x128xf32>
    tpu.vector_store %arg3[%c0_3, %c0_4], %2 {strides = array<i32>} : memref<64x128xf32, #tpu.memory_space<vmem>>, vector<64x128xf32>,
    %c0_i32 = arith.constant 0 : i32
    %4 = arith.cmpi eq, %arg0, %c0_i32 : i32
    %5 = arith.extui %4 : i1 to i32
    %c0_i32_5 = arith.constant 0 : i32
    %6 = arith.cmpi ne, %5, %c0_i32_5 : i32
    scf.if %6 {
      %cst_16 = arith.constant 0.000000e+00 : f32
      %18 = vector.broadcast %cst_16 : f32 to vector<1x128xf32>
      %c0_17 = arith.constant 0 : index
      %c0_18 = arith.constant 0 : index
      %19 = vector.load %arg4[%c0_17, %c0_18] : memref<1x128xf32, #tpu.memory_space<vmem>>, vector<1x128xf32>
      tpu.vector_store %arg4[%c0_17, %c0_18], %18 {strides = array<i32>} : memref<1x128xf32, #tpu.memory_space<vmem>>, vector<1x128xf32>,
      %cst_19 = arith.constant 0.000000e+00 : f32
      %20 = vector.broadcast %cst_19 : f32 to vector<1x128xf32>
      %c0_20 = arith.constant 0 : index
      %c0_21 = arith.constant 0 : index
      %21 = vector.load %arg5[%c0_20, %c0_21] : memref<1x128xf32, #tpu.memory_space<vmem>>, vector<1x128xf32>
      tpu.vector_store %arg5[%c0_20, %c0_21], %20 {strides = array<i32>} : memref<1x128xf32, #tpu.memory_space<vmem>>, vector<1x128xf32>,
    } else {
    }
    %c0_6 = arith.constant 0 : index
    %c0_7 = arith.constant 0 : index
    %7 = vector.load %arg4[%c0_6, %c0_7] : memref<1x128xf32, #tpu.memory_space<vmem>>, vector<1x128xf32>
    %cst_8 = arith.constant dense<0.000000e+00> : vector<128xf32>
    %8 = vector.multi_reduction <add>, %2, %cst_8 [0] : vector<64x128xf32> to vector<128xf32>
    %9 = vector.shape_cast %8 : vector<128xf32> to vector<1x128xf32>
    %10 = arith.addf %7, %9 : vector<1x128xf32>
    %c0_9 = arith.constant 0 : index
    %c0_10 = arith.constant 0 : index
    %11 = vector.load %arg4[%c0_9, %c0_10] : memref<1x128xf32, #tpu.memory_space<vmem>>, vector<1x128xf32>
    tpu.vector_store %arg4[%c0_9, %c0_10], %10 {strides = array<i32>} : memref<1x128xf32, #tpu.memory_space<vmem>>, vector<1x128xf32>,
    %c0_11 = arith.constant 0 : index
    %c0_12 = arith.constant 0 : index
    %12 = vector.load %arg5[%c0_11, %c0_12] : memref<1x128xf32, #tpu.memory_space<vmem>>, vector<1x128xf32>
    %13 = arith.mulf %2, %2 : vector<64x128xf32>
    %cst_13 = arith.constant dense<0.000000e+00> : vector<128xf32>
    %14 = vector.multi_reduction <add>, %13, %cst_13 [0] : vector<64x128xf32> to vector<128xf32>
    %15 = vector.shape_cast %14 : vector<128xf32> to vector<1x128xf32>
    %16 = arith.addf %12, %15 : vector<1x128xf32>
    %c0_14 = arith.constant 0 : index
    %c0_15 = arith.constant 0 : index
    %17 = vector.load %arg5[%c0_14, %c0_15] : memref<1x128xf32, #tpu.memory_space<vmem>>, vector<1x128xf32>
    tpu.vector_store %arg5[%c0_14, %c0_15], %16 {strides = array<i32>} : memref<1x128xf32, #tpu.memory_space<vmem>>, vector<1x128xf32>,
    return
  }
  func.func @transform_0(%arg0: i32) -> (i32, i32) {
    %c0_i32 = arith.constant 0 : i32
    %c0_i32_0 = arith.constant 0 : i32
    return %arg0, %c0_i32 : i32, i32
  }
  func.func @transform_1(%arg0: i32) -> (i32, i32) {
    %c0_i32 = arith.constant 0 : i32
    %c0_i32_0 = arith.constant 0 : i32
    %c0_i32_1 = arith.constant 0 : i32
    return %c0_i32, %c0_i32_0 : i32, i32
  }
  func.func @transform_2(%arg0: i32) -> (i32, i32) {
    %c0_i32 = arith.constant 0 : i32
    %c0_i32_0 = arith.constant 0 : i32
    return %arg0, %c0_i32 : i32, i32
  }
  func.func @transform_3(%arg0: i32) -> (i32, i32) {
    %c0_i32 = arith.constant 0 : i32
    %c0_i32_0 = arith.constant 0 : i32
    %c0_i32_1 = arith.constant 0 : i32
    return %c0_i32, %c0_i32_0 : i32, i32
  }
  func.func @transform_4(%arg0: i32) -> (i32, i32) {
    %c0_i32 = arith.constant 0 : i32
    %c0_i32_0 = arith.constant 0 : i32
    %c0_i32_1 = arith.constant 0 : i32
    return %c0_i32, %c0_i32_0 : i32, i32
  }
}

</mosaic_0001>

<bundles_post_ra>
// kernel: tpu_custom_call.1
= control target key start
LH: loop header
LB: loop body
LE: loop exit
PB: predicated region body
PF: predicated region fallthrough
CT: control target
= control target key end

     0   :  { %10 = vsyncpa [#allocation3], 0  ;;  %s865_s0 = inlined_call_operand.vmem [shape: bf16[128,36], index: 0, kind: input, shape index: {}]   ;;  %s866_s1 = inlined_call_operand.vmem [shape: bf16[36,128], index: 1, kind: input, shape index: {}]   ;;  %s867_s2 = inlined_call_operand.hbm [shape: f32[128,128], index: 2, kind: output, shape index: {0}]   ;;  %s868_s3 = inlined_call_operand.hbm [shape: f32[1,128], index: 3, kind: output, shape index: {1}]   ;;  %s869_s4 = inlined_call_operand.hbm [shape: f32[1,128], index: 4, kind: output, shape index: {2}]  }
   0x1   :  { %12 = vsyncpa [#allocation3 + $0x1], 0 }
   0x2   :  { %13 = vsyncpa [#allocation5], 0  ;;  %s740_s15 = smov 0   ;;  %s742_s16 = smov 0  }
   0x3   :  { %s744_s17 = smov 0   ;;  %s746_s18 = smov 0  }
   0x4 LB: > { %s761_s19 = sadd.s32 4294967295, %s708_s18   ;;  %s469_s20 = sadd.s32 4294967294, %s708_s18   ;;  %s708_s18 = sphi %s746_s18, %s875_s18   ;;  %s704_s17 = sphi %s744_s17, %s874_s17   ;;  %s700_s16 = sphi %s742_s16, %s873_s16   ;;  %s696_s15 = sphi %s740_s15, %s872_s15  }
   0x5   : > { %s765_s21 = sadd.s32 1, %s708_s18   ;;  %s73_s22 = sadd.s32 1, %s704_s17 }
   0x6   : > { %s70_s23 = ssub.s32 %s708_s18, %s765_s21  ;;  %p83_p0 = scmp.ne.s32.totalorder %s704_s17, %s700_s16 }
   0x7   : > { %p71_p1 = scmp.eq.s32.totalorder %s70_s23, 0  ;;  %p84_p2 = scmp.eq.s32.totalorder %s761_s19, 1 }
   0x8   : > { %p89_p3 = scmp.ne.s32.totalorder %s700_s16, %s696_s15  ;;  %p90_p4 = scmp.eq.s32.totalorder %s469_s20, 1 }
   0x9   : > { %s776_s24 = scalar_select %p71_p1, %s704_s17, %s73_s22  }
   0xa   : > { %p780_p5 = por %p84_p2, %p83_p0  ;;  %p784_p6 = por %p90_p4, %p89_p3 }
   0xb   : > { %p472_p7 = scmp.ge.s32.totalorder %s708_s18, 1  ;;  %p162_p8 = scmp.lt.s32.totalorder %s708_s18, 3 }
   0xd   : > { %p163_p9 = pnand %p472_p7, %p162_p8 }
   0xe   : > { %s474_s29 = sshll.u32 (!%p163_p9), %s761_s19, 3  ;;  %s181_s12 = sand.u32 (!%p163_p9), 1, %s700_s16  }
   0xf   : > { %166 = sbr.rel (%p163_p9) target bundleno = 221 (0xdd), region = 28  ;;  %p189_p10 = scmp.lt.s32.totalorder (!%p163_p9), %s474_s29, 15 }
  0x10   : > { %s473_s13 = sshll.u32 (!%p163_p9), %s181_s12, 6  ;;  %p504_p11 = scmp.ne.s32.totalorder (!%p163_p9), %s761_s19, 0 }
  0x11   : > { %s806_s14 = scalar_lea.vmem (!%p163_p9), [#allocation2], %s473_s13 }
  0x14   : > { %v208_v0 = vld [vmem:[%s866_s1 + $0x10] sm:$0x3]  ;;  %vm257_vm0 = vcmask 1041408   ;;  %s877_s29 = smov (!%p189_p10, %s474_s29), 15  ;;  %v519_v4 = vld [vmem:[%s866_s1 + $0x8] sm:$0xff]  ;;  %v518_v5 = vld [vmem:[%s866_s1] sm:$0xff] }
  0x15   : > { %v238_v1 = vunpack.c.l.b16 %v208_v0  ;;  %s475_s6 = sshll.u32 %s877_s29, 2  ;;  %vm244_vm1 = vcmask 293888  }
  0x16   : > { %s192_s11 = scalar_lea.vmem %s865_s0, %s475_s6 }
  0x17   : > { %v241_v2 = vpack.c.b16 %v238_v1, %v238_v1  ;;  %v514_v6 = vld [vmem:[%s192_s11] sm:$0xff]  ;;  %v515_v7 = vld [vmem:[%s192_s11 + $0x8] sm:$0xff]  ;;  %v516_v8 = vld [vmem:[%s192_s11 + $0x10] sm:$0xff] }
  0x18   : > { %v517_v9 = vld [vmem:[%s192_s11 + $0x18] sm:$0xff] }
  0x19   : > { %v259_v3 = vsel %vm257_vm0, %v241_v2, 0 }
  0x1a   : > { %266 = vmatpush.bf16.msra.mxu0 %v259_v3  ;;  %521 = vmatpush.bf16.msra.mxu1 %v259_v3 }
  0x1b   : > { %522 = vmatpush.bf16.msra.mxu2 %v259_v3  ;;  %523 = vmatpush.bf16.msra.mxu3 %v259_v3 }
  0x1e   : > { %267 = vmatpush.bf16.msra.mxu0 %v519_v4  ;;  %524 = vmatpush.bf16.msra.mxu1 %v519_v4 }
  0x1f   : > { %525 = vmatpush.bf16.msra.mxu2 %v519_v4  ;;  %526 = vmatpush.bf16.msra.mxu3 %v519_v4 }
  0x22   : > { %268 = vmatpush.bf16.msra.mxu0 %v518_v5  ;;  %527 = vmatpush.bf16.msra.mxu1 %v518_v5 }
  0x23   : > { %528 = vmatpush.bf16.msra.mxu2 %v518_v5  ;;  %529 = vmatpush.bf16.msra.mxu3 %v518_v5 }
  0x25   : > { %500 = vmatmul.msk.bf16.vlgmr.msra.gmra.mxu0 %vm244_vm1, %v514_v6  ;;  %501 = vmatmul.msk.bf16.vlgmr.msra.gmra.mxu1 %vm244_vm1, %v515_v7 }
  0x26   : > { %502 = vmatmul.msk.bf16.vlgmr.msra.gmra.mxu2 %vm244_vm1, %v516_v8  ;;  %503 = vmatmul.msk.bf16.vlgmr.msra.gmra.mxu3 %vm244_vm1, %v517_v9 }
  0xa2   : > { %v270_v10 = vpop.f32.mrf.mxu0  ;;  %v275_v11 = vpop.f32.mrf.mxu1 }
  0xa3   : > { %290 = vst [vmem:[%s806_s14] sm:$0xff] %v270_v10 }
  0xa4   : > { %292 = vst [vmem:[%s806_s14 + $0x10] sm:$0xff] %v275_v11 }
  0xa9   : > { %v280_v12 = vpop.f32.mrf.mxu2  ;;  %v285_v13 = vpop.f32.mrf.mxu3 }
  0xaa   : > { %294 = vst [vmem:[%s806_s14 + $0x20] sm:$0xff] %v280_v12  ;;  %v272_v14 = vpop.f32.mrf.mxu0  ;;  %v277_v15 = vpop.f32.mrf.mxu1 }
  0xab   : > { %296 = vst [vmem:[%s806_s14 + $0x30] sm:$0xff] %v285_v13 }
  0xac   : > { %291 = vst [vmem:[%s806_s14 + $0x8] sm:$0xff] %v272_v14 }
  0xad   : > { %293 = vst [vmem:[%s806_s14 + $0x18] sm:$0xff] %v277_v15 }
  0xaf   : > { %301 = sbr.rel (%p504_p11) target bundleno = 183 (0xb7), region = 32 }
  0xb1   : > { %v282_v16 = vpop.f32.mrf.mxu2  ;;  %v287_v17 = vpop.f32.mrf.mxu3 }
  0xb2   : > { %295 = vst [vmem:[%s806_s14 + $0x28] sm:$0xff] %v282_v16 }
  0xb3   : > { %297 = vst [vmem:[%s806_s14 + $0x38] sm:$0xff] %v287_v17 }
  0xb4   : > { %v710_v18 = vmov 0.0  }
  0xb5   : > { %302 = vst [vmem:[#allocation4] sm:$0x1] %v710_v18 }
  0xb6   : > { %303 = vst [vmem:[#allocation6] sm:$0x1] %v710_v18 }
  0xb7 PF: > { %v305_v19 = vadd.f32 %v272_v14, %v270_v10  ;;  %v321_v20 = vmul.f32 %v270_v10, %v270_v10  ;;  %v322_v21 = vmul.f32 %v272_v14, %v272_v14  ;;  %v323_v22 = vmul.f32 %v275_v11, %v275_v11  ;;  %s520_s20 = sshll.u32 %s761_s19, 6  ;;  %s357_s28 = sshll.u32 %s806_s14, 4  ;;  %s358_s28 = int_to_ptr.vmem [resolvable:$true] %s357_s28 }
  0xb8   : > { %v324_v24 = vmul.f32 %v277_v15, %v277_v15  ;;  %v325_v27 = vmul.f32 %v280_v12, %v280_v12  ;;  %s356_s27 = scalar_lea.hbm %s867_s2, %s520_s20  ;;  %v326_v30 = vmul.f32 %v282_v16, %v282_v16  ;;  %v327_v33 = vmul.f32 %v285_v13, %v285_v13  ;;  %s345_s30 = scalar_lea.sflag [#allocation3], %s181_s12 }
  0xb9   : > { %v306_v23 = vadd.f32 %v305_v19, %v275_v11  ;;  %v329_v25 = vadd.f32 %v322_v21, %v321_v20  ;;  %s359_s29 = sshll.u32 %s356_s27, 4  ;;  %s606_s9 = scalar_lea.hbm %s867_s2, 128  ;;  %s360_s29 = int_to_ptr.hbm [resolvable:$true] %s359_s29 }
  0xba   : > { %s600_s5 = sshra.s32 %s360_s29, 4  ;;  %s601_s5 = int_to_ptr.hbm [resolvable:$true] %s600_s5 }
  0xbb   : > { %v307_v26 = vadd.f32 %v306_v23, %v277_v15  ;;  %v330_v28 = vadd.f32 %v329_v25, %v323_v22  ;;  %s602_s6 = scalar_lea.hbm %s601_s5, 64  ;;  %p607_p1 = scmp.lt.s32.totalorder %s601_s5, %s867_s2 }
  0xbc   : > { %p603_p12 = scmp.ne.s32.totalorder %s601_s5, %s602_s6  ;;  %p608_p3 = scmp.lt.s32.totalorder %s606_s9, %s602_s6 }
  0xbd   : > { %v308_v29 = vadd.f32 %v307_v26, %v280_v12  ;;  %v331_v31 = vadd.f32 %v330_v28, %v324_v24 }
  0xbe   : > { %p604_p13 = pnand %p603_p12, %p780_p5  ;;  %p609_p4 = por %p608_p3, %p607_p1 }
  0xbf   : > { %v309_v32 = vadd.f32 %v308_v29, %v282_v16  ;;  %v332_v34 = vadd.f32 %v331_v31, %v325_v27 }
  0xc0   : > { %p605_p0 = pneg %p604_p13 }
  0xc2   : > { %p610_p7 = pnand %p609_p4, %p605_p0 }
  0xc4   : > { %613 = shalt.err (!%p610_p7)
}
  0xc5   : > { %s711_s12 = smov 128   ;;  %s712_s13 = smov 8   ;;  %v310_v35 = vadd.f32 %v309_v32, %v285_v13  ;;  %v328_v36 = vmul.f32 %v287_v17, %v287_v17  ;;  %v333_v37 = vadd.f32 %v332_v34, %v326_v30  ;;  %v304_v50 = vld [vmem:[#allocation4] sm:$0x1]  ;;  %v320_v53 = vld [vmem:[#allocation6] sm:$0x1] }
  0xc6   : > { %530 = dma.vmem_to_hbm [thread:$0]  (%p780_p5), %s358_s28, 1024, %s360_s29, %s345_s30, %s711_s12, %s711_s12, %s712_s13  }
  0xc7   : > { %v311_v38 = vadd.f32 %v310_v35, %v287_v17  ;;  %v334_v39 = vadd.f32 %v333_v37, %v327_v33  ;;  %s713_s14 = smov [#allocation4]   ;;  %s374_s23 = sshll.u32 %s868_s3, 4  ;;  %s375_s23 = int_to_ptr.hbm [resolvable:$true] %s374_s23 }
  0xc8   : > { %s372_s20 = sshll.u32 %s713_s14, 4  ;;  %s714_s27 = smov [#allocation6]   ;;  %s373_s20 = int_to_ptr.vmem [resolvable:$true] %s372_s20 }
  0xc9   : > { %v312_v40 = vrot.slane %v311_v38, 4  ;;  %v335_v41 = vadd.f32 %v334_v39, %v328_v36  ;;  %s384_s28 = sshll.u32 %s714_s27, 4  ;;  %s386_s5 = sshll.u32 %s869_s4, 4  ;;  %s385_s28 = int_to_ptr.vmem [resolvable:$true] %s384_s28  ;;  %s387_s5 = int_to_ptr.hbm [resolvable:$true] %s386_s5 }
  0xcb   : > { %v313_v42 = vadd.f32 %v312_v40, %v311_v38  ;;  %v336_v43 = vrot.slane %v335_v41, 4 }
  0xcd   : > { %v314_v44 = vrot.slane %v313_v42, 2  ;;  %v337_v45 = vadd.f32 %v336_v43, %v335_v41 }
  0xcf   : > { %v315_v46 = vadd.f32 %v314_v44, %v313_v42  ;;  %v338_v47 = vrot.slane %v337_v45, 2 }
  0xd1   : > { %v316_v48 = vrot.slane %v315_v46, 1  ;;  %v339_v49 = vadd.f32 %v338_v47, %v337_v45 }
  0xd3   : > { %v317_v51 = vadd.f32 %v316_v48, %v315_v46  ;;  %v340_v52 = vrot.slane %v339_v49, 1 }
  0xd5   : > { %v318_v54 = vadd.f32 %v317_v51, %v304_v50  ;;  %v341_v55 = vadd.f32 %v340_v52, %v339_v49 }
  0xd7   : > { %319 = vst [vmem:[#allocation4] sm:$0x1] %v318_v54  ;;  %v342_v56 = vadd.f32 %v341_v55, %v320_v53 }
  0xd8   : > { %532 = dma.vmem_to_hbm [thread:$0]  (%p84_p2), %s373_s20, 16, %s375_s23, [#allocation5]  }
  0xd9   : > { %343 = vst [vmem:[#allocation6] sm:$0x1] %v342_v56 }
  0xda   : > { %534 = dma.vmem_to_hbm [thread:$0]  (%p84_p2), %s385_s28, 16, %s387_s5, [#allocation5]  }
  0xdb   : > { %687 = dma.done.wait (%p84_p2), [#allocation5], 32  }
  0xdc   : > { %689 = vsyncadd (%p84_p2), [#allocation5], 4294967264 }
  0xdd PF: > { %p548_p5 = scmp.ge.s32.totalorder %s708_s18, 2  ;;  %s408_s6 = sand.u32 1, %s696_s15  }
  0xde   : > { %s409_s7 = scalar_lea.sflag [#allocation3], %s408_s6 }
  0xdf   : > { %p541_p8 = pnand %p548_p5, %p784_p6 }
  0xe1   : > { %p542_p9 = pneg %p541_p8 }
  0xe3   : > { %691 = dma.done.wait (%p542_p9), %s409_s7, 1024  }
  0xe4   : > { %693 = vsyncadd (%p542_p9), %s409_s7, 4294966272  ;;  %p16_p10 = scmp.ge.s32.totalorder %s765_s21, 4   ;;  %s872_s15 = smov %s700_s16 }
  0xe5   : > { %s873_s16 = smov %s704_s17  ;;  %s874_s17 = smov %s776_s24 }
  0xe6   : > { %s875_s18 = smov %s765_s21  ;;  %18 = sbr.rel (!%p16_p10) target bundleno = 4 (0x4), region = 83 }
  0xeb   :  { %415 = vsyncpa [#allocation3], 1 }
  0xec   :  { %417 = vsyncpa [#allocation3 + $0x1], 1 }
  0xed   :  { %418 = vsyncpa [#allocation5], 1 }

</bundles_post_ra>
